<compile_context>
chip_gen: v6e
topology: v6e:2x2x1
jax: 0.10.0
libtpu: 0.0.40
codegen_flags: <defaults>
</compile_context>

<pallas_src>
import functools

import jax
import jax.numpy as jnp
from jax.experimental import pallas as pl
from jax.experimental.pallas import tpu as pltpu


def _round_up(x, m):
    return (x + m - 1) // m * m


def _cdiv(a, b):
    return -(-a // b)


def _vmem_limit_bytes():
    # ~3/4 of physical VMEM (v5e/v6e: 128 MiB -> 96 MiB, v7x: 64 MiB -> 48 MiB);
    # conservative fallback if the query is unavailable.
    try:
        cap = int(pltpu.get_tpu_info().vmem_capacity_bytes)
    except Exception:
        cap = 64 * 1024 * 1024
    return cap * 3 // 4


def _make_kernel(ks, dil, Wp, Cin_pad, TM, activation):
    """Fused conv(ks x ks, s=1) + folded-BN bias + ReLU for one output tile.

    Refs per grid step (n, co, m):
      x_lo_ref : (1, Cin_pad, TM)   compute dtype, flat lanes [m*TM, (m+1)*TM)
      x_hi_ref : (1, Cin_pad, TH)   compute dtype, halo lanes [(m+1)*TM, ...+TH)
      w_ref    : (TCout, ks*ks*Cin_pad) compute dtype, BN scale pre-folded
      b_ref    : (TCout, 1) f32     folded BN bias (+ conv bias)
      o_ref    : (1, TCout, TM)
      col_ref  : (ks*ks*Cin_pad, TM) VMEM scratch — the im2col block
    """

    def kernel(x_lo_ref, x_hi_ref, w_ref, b_ref, o_ref, col_ref):
        # Build the im2col block: one statically shifted copy per tap.  The
        # window [b, b+TM) relative to this tile spans the lo block (lanes
        # [b, TM)) and the first b lanes of the halo block.  All offsets are
        # Python ints -> static, fully supported loads/stores.
        for i in range(ks):
            for j in range(ks):
                t = i * ks + j
                b = i * dil * Wp + j * dil
                r0, r1 = t * Cin_pad, (t + 1) * Cin_pad
                if b == 0:
                    col_ref[r0:r1, :] = x_lo_ref[0]
                else:
                    if b < TM:
                        col_ref[r0:r1, :TM - b] = x_lo_ref[0, :, b:TM]
                    col_ref[r0:r1, TM - b:] = x_hi_ref[0, :, :b]

        # One MXU matmul with K = ks*ks*Cin_pad (9x the per-tap K), f32 accum.
        y = jnp.dot(w_ref[...], col_ref[...],
                    preferred_element_type=jnp.float32)
        y = y + b_ref[...]                       # folded BN bias
        if activation:
            y = jnp.maximum(y, 0.0)
        o_ref[0] = y.astype(o_ref.dtype)

    return kernel


@functools.partial(
    jax.jit,
    static_argnames=("stride", "pad", "dil", "groups", "batch_norm",
                     "activation", "compute_dtype", "out_dtype"))
def conv_bn_relu(x_nchw, weight, gamma=None, beta=None, run_mean=None,
                 run_var=None, conv_bias=None, *, stride=1, pad=1, dil=1,
                 groups=1, eps=1e-5, batch_norm=True, activation=True,
                 compute_dtype=jnp.bfloat16, out_dtype=jnp.float32):
    """ConvBNReLU forward.  x_nchw: (N, Cin, H, W) -> (N, Cout, Ho, Wo)."""
    N, Cin, H, W = x_nchw.shape
    Cout, Cin_w, kh, kw = weight.shape
    assert kh == kw, "square kernels only"
    assert Cin_w == Cin
    ks = kh
    assert groups == 1, "groups != 1 not implemented"   # TODO(synk): grouped conv
    assert stride == 1, "stride != 1 not implemented"   # TODO(synk): strided conv

    Hp, Wp = H + 2 * pad, W + 2 * pad
    Ho = Hp - dil * (ks - 1)
    Wo = Wp - dil * (ks - 1)
    assert Ho > 0 and Wo > 0

    LANE = 128
    M2 = Ho * Wp                               # flattened output rows (incl. wrap cols)
    halo = (ks - 1) * dil * (Wp + 1)           # largest static tap shift
    TH = _round_up(halo, LANE)                 # halo block width (lanes)
    # Output tile width: multiple of TH (integer halo block index) and of 128
    # (lane-dense stores), >= 512 lanes when there is enough work, capped so
    # tiny layers don't over-pad.
    TM = min(_round_up(max(512, 2 * TH), TH), _round_up(M2, TH))
    TM = max(TM, TH)
    M2_pad = _round_up(M2, TM)
    num_m = M2_pad // TM
    S = M2_pad + TM                            # flat length incl. zero tail for the halo

    # Channel padding: sublane-aligned tap blocks and MXU-friendly Cout tiles.
    Cin_pad = _round_up(Cin, 8)
    KK = ks * ks * Cin_pad
    n_co = _cdiv(_round_up(Cout, 8), 256)
    TCout = _round_up(_cdiv(_round_up(Cout, 8), n_co), 8)
    Cout_pad = TCout * n_co

    # ---- fold BN (eval mode, running stats) + optional conv bias (f32) ------
    if batch_norm:
        scale = gamma.astype(jnp.float32) * jax.lax.rsqrt(
            run_var.astype(jnp.float32) + eps)                    # (Cout,)
        shift = beta.astype(jnp.float32) - run_mean.astype(jnp.float32) * scale
    else:
        scale = jnp.ones((Cout,), jnp.float32)
        shift = jnp.zeros((Cout,), jnp.float32)
    if conv_bias is not None:
        shift = shift + conv_bias.astype(jnp.float32) * scale

    # Weights: (Cout, Cin, kh, kw) -> (Cout_pad, ks*ks*Cin_pad), BN scale folded
    # in f32 before the compute-dtype cast (tap-major rows match the im2col).
    w_t = jnp.transpose(weight, (0, 2, 3, 1)).astype(jnp.float32)  # (Cout,ks,ks,Cin)
    w_t = w_t * scale[:, None, None, None]
    w_t = jnp.pad(w_t, ((0, Cout_pad - Cout), (0, 0), (0, 0),
                        (0, Cin_pad - Cin)))
    w_fused = w_t.reshape(Cout_pad, KK).astype(compute_dtype)
    bias = jnp.pad(shift, (0, Cout_pad - Cout)).reshape(Cout_pad, 1)
    bias = bias.astype(jnp.float32)

    # ---- input: zero-pad channels + spatial border, flatten H,W (channel-
    # major, no transposes), zero tail so every halo block is in range. --------
    # TODO(synk): fuse this pad/cast into the pallas_call input DMA
    # (allow_input_fusion) to remove ~1x input HBM traffic.
    xp = jnp.pad(x_nchw, ((0, 0), (0, Cin_pad - Cin), (pad, pad), (pad, pad)))
    x_flat = xp.reshape(N, Cin_pad, Hp * Wp)
    x_flat = jnp.pad(x_flat, ((0, 0), (0, 0), (0, S - Hp * Wp)))
    x_flat = x_flat.astype(compute_dtype)

    kernel = _make_kernel(ks, dil, Wp, Cin_pad, TM, activation)

    in_item = jnp.dtype(compute_dtype).itemsize
    out_item = jnp.dtype(out_dtype).itemsize
    bytes_accessed = int(
        N * Cin_pad * S * in_item                      # main input stream
        + N * num_m * Cin_pad * TH * in_item           # halo re-reads
        + Cout_pad * KK * in_item + Cout_pad * 4       # weights + bias
        + N * Cout_pad * M2_pad * out_item)            # output writeback

    hi_stride = TM // TH

    out = pl.pallas_call(
        kernel,
        out_shape=jax.ShapeDtypeStruct((N, Cout_pad, M2_pad), out_dtype),
        grid_spec=pltpu.PrefetchScalarGridSpec(
            num_scalar_prefetch=0,
            grid=(N, n_co, num_m),                     # m fastest: weights stay resident
            in_specs=[
                pl.BlockSpec((1, Cin_pad, TM), lambda n, co, m: (n, 0, m)),
                pl.BlockSpec((1, Cin_pad, TH),
                             lambda n, co, m: (n, 0, (m + 1) * hi_stride)),
                pl.BlockSpec((TCout, KK), lambda n, co, m: (co, 0)),
                pl.BlockSpec((TCout, 1), lambda n, co, m: (co, 0)),
            ],
            out_specs=pl.BlockSpec((1, TCout, TM), lambda n, co, m: (n, co, m)),
            scratch_shapes=[pltpu.VMEM((KK, TM), compute_dtype)],
        ),
        compiler_params=pltpu.CompilerParams(
            dimension_semantics=("parallel", "parallel", "parallel"),
            vmem_limit_bytes=_vmem_limit_bytes()),
        cost_estimate=pl.CostEstimate(
            flops=2 * N * Cout_pad * M2_pad * KK,
            transcendentals=0,
            bytes_accessed=bytes_accessed),
    )(x_flat, x_flat, w_fused, bias)

    # (N, Cout_pad, M2_pad) -> exact NCHW output (drop channel/spatial padding
    # and the Wp-Wo row-wrap columns).
    # TODO(synk): a fused consumer could take the padded channel-major layout
    # directly and skip this output-sized copy.
    out = out[:, :Cout, :M2].reshape(N, Cout, Ho, Wp)[:, :, :, :Wo]
    return out


# ------------------------------ reference -------------------------------------
def _reference(x, weight, gamma, beta, run_mean, run_var, *, stride=1, pad=1,
               dil=1, eps=1e-5):
    y = jax.lax.conv_general_dilated(
        x, weight, window_strides=(stride, stride),
        padding=((pad, pad), (pad, pad)), rhs_dilation=(dil, dil),
        dimension_numbers=("NCHW", "OIHW", "NCHW"))
    scale = (gamma / jnp.sqrt(run_var + eps)).reshape(1, -1, 1, 1)
    bias = (beta - run_mean * gamma / jnp.sqrt(run_var + eps)).reshape(1, -1, 1, 1)
    return jnp.maximum(y * scale + bias, 0.0)


# -------------------------------- main -----------------------------------------
if __name__ == "__main__":
    key = jax.random.PRNGKey(0)
    k_x, k_w, k_g, k_b, k_m, k_v = jax.random.split(key, 6)

    N, Cin, H, W = 2, 4, 16, 16
    Cout, ks = 8, 3

    x = jax.random.normal(k_x, (N, Cin, H, W), dtype=jnp.float32)
    weight = jax.random.normal(k_w, (Cout, Cin, ks, ks), dtype=jnp.float32) * 0.1
    gamma = 1.0 + 0.1 * jax.random.normal(k_g, (Cout,), dtype=jnp.float32)
    beta = 0.1 * jax.random.normal(k_b, (Cout,), dtype=jnp.float32)
    run_mean = 0.1 * jax.random.normal(k_m, (Cout,), dtype=jnp.float32)
    run_var = jnp.abs(jax.random.normal(k_v, (Cout,), dtype=jnp.float32)) + 0.5

    ref = _reference(x, weight, gamma, beta, run_mean, run_var)

    # Exactness check: f32 operands through the same fused kernel.
    out_f32 = conv_bn_relu(x, weight, gamma, beta, run_mean, run_var,
                           compute_dtype=jnp.float32)
    out_f32 = jax.block_until_ready(out_f32)
    assert out_f32.shape == (N, Cout, H, W), out_f32.shape
    assert jnp.allclose(out_f32, ref, atol=1e-3, rtol=1e-3), float(
        jnp.max(jnp.abs(out_f32 - ref)))

    # Perf-default path: bf16 operands, f32 MXU accumulation.
    out_bf16 = conv_bn_relu(x, weight, gamma, beta, run_mean, run_var)
    out_bf16 = jax.block_until_ready(out_bf16)
    assert out_bf16.shape == (N, Cout, H, W), out_bf16.shape
    assert jnp.allclose(out_bf16, ref, atol=5e-2, rtol=5e-2), float(
        jnp.max(jnp.abs(out_bf16 - ref)))

    print("KERNEL_OK")
</pallas_src>

<mosaic_0001>
module attributes {stable_mosaic.version = 11 : i64} {
  func.func @kernel(%arg0: i32, %arg1: i32, %arg2: i32, %arg3: memref<1x8x384xf32, #tpu.memory_space<vmem>>, %arg4: memref<1x8x128xf32, #tpu.memory_space<vmem>>, %arg5: memref<8x72xf32, #tpu.memory_space<vmem>>, %arg6: memref<8x1xf32, #tpu.memory_space<vmem>>, %arg7: memref<1x8x384xf32, #tpu.memory_space<vmem>>, %arg8: memref<72x384xf32, #tpu.memory_space<vmem>>) attributes {dimension_semantics = [#tpu.dimension_semantics<parallel>, #tpu.dimension_semantics<parallel>, #tpu.dimension_semantics<parallel>], iteration_bounds = array<i64: 2, 1, 1>, scalar_prefetch = 0 : i64, scratch_operands = 1 : i64, tpu.core_type = #tpu.core_type<tc>, window_params = [{transform_indices = @transform_0, window_bounds = array<i64: 1, 8, 384>}, {transform_indices = @transform_1, window_bounds = array<i64: 1, 8, 128>}, {transform_indices = @transform_2, window_bounds = array<i64: 8, 72>}, {transform_indices = @transform_3, window_bounds = array<i64: 8, 1>}, {transform_indices = @transform_4, window_bounds = array<i64: 1, 8, 384>}]} {
    %c0 = arith.constant 0 : index
    %c0_0 = arith.constant 0 : index
    %c0_1 = arith.constant 0 : index
    %0 = vector.load %arg3[%c0, %c0_0, %c0_1] : memref<1x8x384xf32, #tpu.memory_space<vmem>>, vector<1x8x384xf32>
    %1 = vector.shape_cast %0 : vector<1x8x384xf32> to vector<8x384xf32>
    %c0_2 = arith.constant 0 : index
    %c0_3 = arith.constant 0 : index
    %2 = vector.load %arg8[%c0_2, %c0_3] : memref<72x384xf32, #tpu.memory_space<vmem>>, vector<8x384xf32>
    tpu.vector_store %arg8[%c0_2, %c0_3], %1 {strides = array<i32>} : memref<72x384xf32, #tpu.memory_space<vmem>>, vector<8x384xf32>,
    %c0_4 = arith.constant 0 : index
    %c0_5 = arith.constant 0 : index
    %c1 = arith.constant 1 : index
    %3 = vector.load %arg3[%c0_4, %c0_5, %c1] : memref<1x8x384xf32, #tpu.memory_space<vmem>>, vector<1x8x383xf32>
    %4 = vector.shape_cast %3 : vector<1x8x383xf32> to vector<8x383xf32>
    %c8 = arith.constant 8 : index
    %c0_6 = arith.constant 0 : index
    %5 = vector.load %arg8[%c8, %c0_6] : memref<72x384xf32, #tpu.memory_space<vmem>>, vector<8x383xf32>
    tpu.vector_store %arg8[%c8, %c0_6], %4 {strides = array<i32>} : memref<72x384xf32, #tpu.memory_space<vmem>>, vector<8x383xf32>,
    %c0_7 = arith.constant 0 : index
    %c0_8 = arith.constant 0 : index
    %c0_9 = arith.constant 0 : index
    %6 = vector.load %arg4[%c0_7, %c0_8, %c0_9] : memref<1x8x128xf32, #tpu.memory_space<vmem>>, vector<1x8x1xf32>
    %7 = vector.shape_cast %6 : vector<1x8x1xf32> to vector<8x1xf32>
    %c8_10 = arith.constant 8 : index
    %c383 = arith.constant 383 : index
    %8 = vector.load %arg8[%c8_10, %c383] : memref<72x384xf32, #tpu.memory_space<vmem>>, vector<8x1xf32>
    tpu.vector_store %arg8[%c8_10, %c383], %7 {strides = array<i32>} : memref<72x384xf32, #tpu.memory_space<vmem>>, vector<8x1xf32>,
    %c0_11 = arith.constant 0 : index
    %c0_12 = arith.constant 0 : index
    %c2 = arith.constant 2 : index
    %9 = vector.load %arg3[%c0_11, %c0_12, %c2] : memref<1x8x384xf32, #tpu.memory_space<vmem>>, vector<1x8x382xf32>
    %10 = vector.shape_cast %9 : vector<1x8x382xf32> to vector<8x382xf32>
    %c16 = arith.constant 16 : index
    %c0_13 = arith.constant 0 : index
    %11 = vector.load %arg8[%c16, %c0_13] : memref<72x384xf32, #tpu.memory_space<vmem>>, vector<8x382xf32>
    tpu.vector_store %arg8[%c16, %c0_13], %10 {strides = array<i32>} : memref<72x384xf32, #tpu.memory_space<vmem>>, vector<8x382xf32>,
    %c0_14 = arith.constant 0 : index
    %c0_15 = arith.constant 0 : index
    %c0_16 = arith.constant 0 : index
    %12 = vector.load %arg4[%c0_14, %c0_15, %c0_16] : memref<1x8x128xf32, #tpu.memory_space<vmem>>, vector<1x8x2xf32>
    %13 = vector.shape_cast %12 : vector<1x8x2xf32> to vector<8x2xf32>
    %c16_17 = arith.constant 16 : index
    %c382 = arith.constant 382 : index
    %14 = vector.load %arg8[%c16_17, %c382] : memref<72x384xf32, #tpu.memory_space<vmem>>, vector<8x2xf32>
    tpu.vector_store %arg8[%c16_17, %c382], %13 {strides = array<i32>} : memref<72x384xf32, #tpu.memory_space<vmem>>, vector<8x2xf32>,
    %c0_18 = arith.constant 0 : index
    %c0_19 = arith.constant 0 : index
    %c18 = arith.constant 18 : index
    %15 = vector.load %arg3[%c0_18, %c0_19, %c18] : memref<1x8x384xf32, #tpu.memory_space<vmem>>, vector<1x8x366xf32>
    %16 = vector.shape_cast %15 : vector<1x8x366xf32> to vector<8x366xf32>
    %c24 = arith.constant 24 : index
    %c0_20 = arith.constant 0 : index
    %17 = vector.load %arg8[%c24, %c0_20] : memref<72x384xf32, #tpu.memory_space<vmem>>, vector<8x366xf32>
    tpu.vector_store %arg8[%c24, %c0_20], %16 {strides = array<i32>} : memref<72x384xf32, #tpu.memory_space<vmem>>, vector<8x366xf32>,
    %c0_21 = arith.constant 0 : index
    %c0_22 = arith.constant 0 : index
    %c0_23 = arith.constant 0 : index
    %18 = vector.load %arg4[%c0_21, %c0_22, %c0_23] : memref<1x8x128xf32, #tpu.memory_space<vmem>>, vector<1x8x18xf32>
    %19 = vector.shape_cast %18 : vector<1x8x18xf32> to vector<8x18xf32>
    %c24_24 = arith.constant 24 : index
    %c366 = arith.constant 366 : index
    %20 = vector.load %arg8[%c24_24, %c366] : memref<72x384xf32, #tpu.memory_space<vmem>>, vector<8x18xf32>
    tpu.vector_store %arg8[%c24_24, %c366], %19 {strides = array<i32>} : memref<72x384xf32, #tpu.memory_space<vmem>>, vector<8x18xf32>,
    %c0_25 = arith.constant 0 : index
    %c0_26 = arith.constant 0 : index
    %c19 = arith.constant 19 : index
    %21 = vector.load %arg3[%c0_25, %c0_26, %c19] : memref<1x8x384xf32, #tpu.memory_space<vmem>>, vector<1x8x365xf32>
    %22 = vector.shape_cast %21 : vector<1x8x365xf32> to vector<8x365xf32>
    %c32 = arith.constant 32 : index
    %c0_27 = arith.constant 0 : index
    %23 = vector.load %arg8[%c32, %c0_27] : memref<72x384xf32, #tpu.memory_space<vmem>>, vector<8x365xf32>
    tpu.vector_store %arg8[%c32, %c0_27], %22 {strides = array<i32>} : memref<72x384xf32, #tpu.memory_space<vmem>>, vector<8x365xf32>,
    %c0_28 = arith.constant 0 : index
    %c0_29 = arith.constant 0 : index
    %c0_30 = arith.constant 0 : index
    %24 = vector.load %arg4[%c0_28, %c0_29, %c0_30] : memref<1x8x128xf32, #tpu.memory_space<vmem>>, vector<1x8x19xf32>
    %25 = vector.shape_cast %24 : vector<1x8x19xf32> to vector<8x19xf32>
    %c32_31 = arith.constant 32 : index
    %c365 = arith.constant 365 : index
    %26 = vector.load %arg8[%c32_31, %c365] : memref<72x384xf32, #tpu.memory_space<vmem>>, vector<8x19xf32>
    tpu.vector_store %arg8[%c32_31, %c365], %25 {strides = array<i32>} : memref<72x384xf32, #tpu.memory_space<vmem>>, vector<8x19xf32>,
    %c0_32 = arith.constant 0 : index
    %c0_33 = arith.constant 0 : index
    %c20 = arith.constant 20 : index
    %27 = vector.load %arg3[%c0_32, %c0_33, %c20] : memref<1x8x384xf32, #tpu.memory_space<vmem>>, vector<1x8x364xf32>
    %28 = vector.shape_cast %27 : vector<1x8x364xf32> to vector<8x364xf32>
    %c40 = arith.constant 40 : index
    %c0_34 = arith.constant 0 : index
    %29 = vector.load %arg8[%c40, %c0_34] : memref<72x384xf32, #tpu.memory_space<vmem>>, vector<8x364xf32>
    tpu.vector_store %arg8[%c40, %c0_34], %28 {strides = array<i32>} : memref<72x384xf32, #tpu.memory_space<vmem>>, vector<8x364xf32>,
    %c0_35 = arith.constant 0 : index
    %c0_36 = arith.constant 0 : index
    %c0_37 = arith.constant 0 : index
    %30 = vector.load %arg4[%c0_35, %c0_36, %c0_37] : memref<1x8x128xf32, #tpu.memory_space<vmem>>, vector<1x8x20xf32>
    %31 = vector.shape_cast %30 : vector<1x8x20xf32> to vector<8x20xf32>
    %c40_38 = arith.constant 40 : index
    %c364 = arith.constant 364 : index
    %32 = vector.load %arg8[%c40_38, %c364] : memref<72x384xf32, #tpu.memory_space<vmem>>, vector<8x20xf32>
    tpu.vector_store %arg8[%c40_38, %c364], %31 {strides = array<i32>} : memref<72x384xf32, #tpu.memory_space<vmem>>, vector<8x20xf32>,
    %c0_39 = arith.constant 0 : index
    %c0_40 = arith.constant 0 : index
    %c36 = arith.constant 36 : index
    %33 = vector.load %arg3[%c0_39, %c0_40, %c36] : memref<1x8x384xf32, #tpu.memory_space<vmem>>, vector<1x8x348xf32>
    %34 = vector.shape_cast %33 : vector<1x8x348xf32> to vector<8x348xf32>
    %c48 = arith.constant 48 : index
    %c0_41 = arith.constant 0 : index
    %35 = vector.load %arg8[%c48, %c0_41] : memref<72x384xf32, #tpu.memory_space<vmem>>, vector<8x348xf32>
    tpu.vector_store %arg8[%c48, %c0_41], %34 {strides = array<i32>} : memref<72x384xf32, #tpu.memory_space<vmem>>, vector<8x348xf32>,
    %c0_42 = arith.constant 0 : index
    %c0_43 = arith.constant 0 : index
    %c0_44 = arith.constant 0 : index
    %36 = vector.load %arg4[%c0_42, %c0_43, %c0_44] : memref<1x8x128xf32, #tpu.memory_space<vmem>>, vector<1x8x36xf32>
    %37 = vector.shape_cast %36 : vector<1x8x36xf32> to vector<8x36xf32>
    %c48_45 = arith.constant 48 : index
    %c348 = arith.constant 348 : index
    %38 = vector.load %arg8[%c48_45, %c348] : memref<72x384xf32, #tpu.memory_space<vmem>>, vector<8x36xf32>
    tpu.vector_store %arg8[%c48_45, %c348], %37 {strides = array<i32>} : memref<72x384xf32, #tpu.memory_space<vmem>>, vector<8x36xf32>,
    %c0_46 = arith.constant 0 : index
    %c0_47 = arith.constant 0 : index
    %c37 = arith.constant 37 : index
    %39 = vector.load %arg3[%c0_46, %c0_47, %c37] : memref<1x8x384xf32, #tpu.memory_space<vmem>>, vector<1x8x347xf32>
    %40 = vector.shape_cast %39 : vector<1x8x347xf32> to vector<8x347xf32>
    %c56 = arith.constant 56 : index
    %c0_48 = arith.constant 0 : index
    %41 = vector.load %arg8[%c56, %c0_48] : memref<72x384xf32, #tpu.memory_space<vmem>>, vector<8x347xf32>
    tpu.vector_store %arg8[%c56, %c0_48], %40 {strides = array<i32>} : memref<72x384xf32, #tpu.memory_space<vmem>>, vector<8x347xf32>,
    %c0_49 = arith.constant 0 : index
    %c0_50 = arith.constant 0 : index
    %c0_51 = arith.constant 0 : index
    %42 = vector.load %arg4[%c0_49, %c0_50, %c0_51] : memref<1x8x128xf32, #tpu.memory_space<vmem>>, vector<1x8x37xf32>
    %43 = vector.shape_cast %42 : vector<1x8x37xf32> to vector<8x37xf32>
    %c56_52 = arith.constant 56 : index
    %c347 = arith.constant 347 : index
    %44 = vector.load %arg8[%c56_52, %c347] : memref<72x384xf32, #tpu.memory_space<vmem>>, vector<8x37xf32>
    tpu.vector_store %arg8[%c56_52, %c347], %43 {strides = array<i32>} : memref<72x384xf32, #tpu.memory_space<vmem>>, vector<8x37xf32>,
    %c0_53 = arith.constant 0 : index
    %c0_54 = arith.constant 0 : index
    %c38 = arith.constant 38 : index
    %45 = vector.load %arg3[%c0_53, %c0_54, %c38] : memref<1x8x384xf32, #tpu.memory_space<vmem>>, vector<1x8x346xf32>
    %46 = vector.shape_cast %45 : vector<1x8x346xf32> to vector<8x346xf32>
    %c64 = arith.constant 64 : index
    %c0_55 = arith.constant 0 : index
    %47 = vector.load %arg8[%c64, %c0_55] : memref<72x384xf32, #tpu.memory_space<vmem>>, vector<8x346xf32>
    tpu.vector_store %arg8[%c64, %c0_55], %46 {strides = array<i32>} : memref<72x384xf32, #tpu.memory_space<vmem>>, vector<8x346xf32>,
    %c0_56 = arith.constant 0 : index
    %c0_57 = arith.constant 0 : index
    %c0_58 = arith.constant 0 : index
    %48 = vector.load %arg4[%c0_56, %c0_57, %c0_58] : memref<1x8x128xf32, #tpu.memory_space<vmem>>, vector<1x8x38xf32>
    %49 = vector.shape_cast %48 : vector<1x8x38xf32> to vector<8x38xf32>
    %c64_59 = arith.constant 64 : index
    %c346 = arith.constant 346 : index
    %50 = vector.load %arg8[%c64_59, %c346] : memref<72x384xf32, #tpu.memory_space<vmem>>, vector<8x38xf32>
    tpu.vector_store %arg8[%c64_59, %c346], %49 {strides = array<i32>} : memref<72x384xf32, #tpu.memory_space<vmem>>, vector<8x38xf32>,
    %c0_60 = arith.constant 0 : index
    %c0_61 = arith.constant 0 : index
    %51 = vector.load %arg5[%c0_60, %c0_61] : memref<8x72xf32, #tpu.memory_space<vmem>>, vector<8x72xf32>
    %c0_62 = arith.constant 0 : index
    %c0_63 = arith.constant 0 : index
    %52 = vector.load %arg8[%c0_62, %c0_63] : memref<72x384xf32, #tpu.memory_space<vmem>>, vector<72x384xf32>
    %cst = arith.constant dense<0.000000e+00> : vector<8x384xf32>
    %53 = tpu.matmul %51, %52, %cst {dimension_numbers = #tpu.dot_dimension_numbers<[1], [0], [0], [1], [0, 0, 1, 1], [], []>} : vector<8x72xf32>, vector<72x384xf32>, vector<8x384xf32> -> vector<8x384xf32>
    %c0_64 = arith.constant 0 : index
    %c0_65 = arith.constant 0 : index
    %54 = vector.load %arg6[%c0_64, %c0_65] : memref<8x1xf32, #tpu.memory_space<vmem>>, vector<8x1xf32>
    %55 = vector.broadcast %54 : vector<8x1xf32> to vector<8x384xf32>
    %56 = arith.addf %53, %55 : vector<8x384xf32>
    %cst_66 = arith.constant 0.000000e+00 : f32
    %57 = vector.broadcast %cst_66 : f32 to vector<8x384xf32>
    %58 = arith.maximumf %56, %57 : vector<8x384xf32>
    %c0_67 = arith.constant 0 : index
    %c0_68 = arith.constant 0 : index
    %c0_69 = arith.constant 0 : index
    %59 = vector.load %arg7[%c0_67, %c0_68, %c0_69] : memref<1x8x384xf32, #tpu.memory_space<vmem>>, vector<1x8x384xf32>
    %60 = vector.shape_cast %59 : vector<1x8x384xf32> to vector<8x384xf32>
    %61 = vector.shape_cast %58 : vector<8x384xf32> to vector<1x8x384xf32>
    tpu.vector_store %arg7[%c0_67, %c0_68, %c0_69], %61 {strides = array<i32>} : memref<1x8x384xf32, #tpu.memory_space<vmem>>, vector<1x8x384xf32>,
    return
  }
  func.func @transform_0(%arg0: i32, %arg1: i32, %arg2: i32) -> (i32, i32, i32) {
    %c0_i32 = arith.constant 0 : i32
    %c0_i32_0 = arith.constant 0 : i32
    return %arg0, %c0_i32, %arg2 : i32, i32, i32
  }
  func.func @transform_1(%arg0: i32, %arg1: i32, %arg2: i32) -> (i32, i32, i32) {
    %c1_i32 = arith.constant 1 : i32
    %0 = arith.addi %arg2, %c1_i32 : i32
    %c3_i32 = arith.constant 3 : i32
    %1 = arith.muli %0, %c3_i32 : i32
    %c0_i32 = arith.constant 0 : i32
    %c0_i32_0 = arith.constant 0 : i32
    return %arg0, %c0_i32, %1 : i32, i32, i32
  }
  func.func @transform_2(%arg0: i32, %arg1: i32, %arg2: i32) -> (i32, i32) {
    %c0_i32 = arith.constant 0 : i32
    %c0_i32_0 = arith.constant 0 : i32
    return %arg1, %c0_i32 : i32, i32
  }
  func.func @transform_3(%arg0: i32, %arg1: i32, %arg2: i32) -> (i32, i32) {
    %c0_i32 = arith.constant 0 : i32
    %c0_i32_0 = arith.constant 0 : i32
    return %arg1, %c0_i32 : i32, i32
  }
  func.func @transform_4(%arg0: i32, %arg1: i32, %arg2: i32) -> (i32, i32, i32) {
    %c0_i32 = arith.constant 0 : i32
    return %arg0, %arg1, %arg2 : i32, i32, i32
  }
}

</mosaic_0001>

<bundles_post_ra>
// kernel: conv_bn_relu.1
= control target key start
LH: loop header
LB: loop body
LE: loop exit
PB: predicated region body
PF: predicated region fallthrough
CT: control target
= control target key end

     0   :  { %s1049_s15 = smov 0   ;;  %s1051_s16 = smov 0   ;;  %s1141_s0 = inlined_call_operand.vmem [shape: f32[2,8,768], index: 0, kind: input, shape index: {}, may-alias: {0,1}]   ;;  %s1142_s1 = inlined_call_operand.vmem [shape: f32[2,8,768], index: 1, kind: input, shape index: {}, may-alias: {0,1}]   ;;  %s1143_s2 = inlined_call_operand.vmem [shape: f32[8,72], index: 2, kind: input, shape index: {}]   ;;  %s1144_s3 = inlined_call_operand.vmem [shape: f32[8,1], index: 3, kind: input, shape index: {}]   ;;  %s1145_s4 = inlined_call_operand.vmem [shape: f32[2,8,384], index: 4, kind: output, shape index: {}]  }
   0x1   :  { %s1053_s17 = smov 0  }
   0x2 LB: > { %s33_s18 = sadd.s32 1, %s1007_s16  ;;  %p908_p0 = scmp.ge.s32.totalorder %s1011_s17, 1  ;;  %s1011_s17 = sphi %s1053_s17, %s14_s17   ;;  %s1007_s16 = sphi %s1051_s16, %s1147_s16   ;;  %s1003_s15 = sphi %s1049_s15, %s1146_s15  }
   0x3   : > { %p35_p1 = scmp.ge.s32.totalorder %s33_s18, 2  ;;  %p233_p2 = scmp.lt.s32.totalorder %s1011_s17, 3 }
   0x5   : > { %s1149_s18 = smov (%p35_p1, %s33_s18), 0  ;;  %p234_p3 = pnand %p908_p0, %p233_p2 }
   0x6   : > { %p290_p4 = scmp.lt.s32.totalorder (!%p234_p3), %s1003_s15, 1  ;;  %s1013_s23 = smov (!%p234_p3), 90  }
   0x7   : > { %237 = sbr.rel (%p234_p3) target bundleno = 403 (0x193), region = 36  ;;  %s1014_s24 = smov (!%p234_p3), 91  }
   0x8   : > { %s1016_s29 = smov (!%p234_p3), 92   ;;  %s1017_s30 = smov (!%p234_p3), 108  }
   0x9   : > { %s1018_s5 = smov (!%p234_p3), 109   ;;  %s1019_s6 = smov (!%p234_p3), 110  }
   0xa   : > { %s1020_s7 = smov (!%p234_p3), 126   ;;  %s1021_s8 = smov (!%p234_p3), 127  }
   0xc   : > { %s1151_s15 = smov (!%p290_p4, %s1003_s15), 1  ;;  %v1015_v3 = vmov 0.0   ;;  %vm1022_vm0 = vmmov 0   ;;  %v1023_v5 = vmov 0   ;;  %v591_v6 = vld [vmem:[%s1144_s3] sm:$0xff]  ;;  %vm547_vm1 = vcmask 736256  }
   0xd   : > { %s949_s19 = smul.u32 48, %s1151_s15  ;;  %928 = vmatprep.subr.mxu1 %v1015_v3  ;;  %665 = vmatprep.mubr.f32.mxu0 %v1015_v3  ;;  %vm519_vm2 = vcmask 744448   ;;  %vm491_vm3 = vcmask 752640   ;;  %vm561_vm4 = vcmask 1048272   ;;  %vm463_vm5 = vcmask 883712   ;;  %v563_v58 = vld [vmem:[%s1143_s2] sm:$0xff] }
   0xe   : > { %946 = vmatprep.mubr.msk.f32.mxu1 %vm1022_vm0, %v1015_v3  ;;  %988 = vset.pattern.permute.xlu0 %v1023_v5  ;;  %vm533_vm6 = vcmask 1048280   ;;  %vm435_vm7 = vcmask 891904   ;;  %vm505_vm8 = vcmask 1048288   ;;  %vm407_vm9 = vcmask 900096   ;;  %s951_s13 = smul.u32 24, %s1151_s15 }
   0xf   : > { %s297_s22 = scalar_lea.vmem %s1141_s0, %s949_s19  ;;  %s917_s25 = sadd.s32 24, %s949_s19  ;;  %vm477_vm10 = vcmask 1048416   ;;  %vm379_vm11 = vcmask 1031168   ;;  %vm449_vm12 = vcmask 1048424   ;;  %vm351_vm13 = vcmask 1039360  }
  0x10   : > { %v1073_v0 = vld [vmem:[%s297_s22 + $0x8] sm:$0xff]  ;;  %v1075_v1 = vld [vmem:[%s297_s22] sm:$0xff]  ;;  %v1077_v2 = vld [vmem:[%s297_s22 + $0x10] sm:$0xff]  ;;  %s308_s28 = scalar_lea.vmem %s1142_s1, %s917_s25  ;;  %vm421_vm14 = vcmask 1048432   ;;  %vm393_vm15 = vcmask 1048560   ;;  %vm365_vm0 = vcmask 1048568   ;;  %s331_s20 = scalar_lea.vmem %s1145_s4, %s951_s13 }
  0x11   : > { %543 = vrot.lane.b32.xlu0 %v1073_v0, %s1013_s23  ;;  %541 = vrot.lane.b32.xlu1 %v1075_v1, %s1013_s23  ;;  %v556_v4 = vld [vmem:[%s308_s28] sm:$0xff] }
  0x15   : > { %545 = vrot.lane.b32.xlu0 %v1077_v2, %s1013_s23  ;;  %515 = vrot.lane.b32.xlu1 %v1073_v0, %s1014_s24 }
  0x19   : > { %517 = vrot.lane.b32.xlu0 %v1077_v2, %s1014_s24  ;;  %513 = vrot.lane.b32.xlu1 %v1075_v1, %s1014_s24 }
  0x1d   : > { %489 = vrot.lane.b32.xlu1 %v1077_v2, %s1016_s29  ;;  %487 = vrot.lane.b32.xlu0 %v1073_v0, %s1016_s29 }
  0x21   : > { %558 = vrot.lane.b32.xlu0 %v556_v4, %s1013_s23  ;;  %485 = vrot.lane.b32.xlu1 %v1075_v1, %s1016_s29 }
  0x25   : > { %461 = vrot.lane.b32.xlu1 %v1077_v2, %s1017_s30  ;;  %459 = vrot.lane.b32.xlu0 %v1073_v0, %s1017_s30 }
  0x29   : > { %530 = vrot.lane.b32.xlu0 %v556_v4, %s1014_s24  ;;  %457 = vrot.lane.b32.xlu1 %v1075_v1, %s1017_s30 }
  0x2d   : > { %433 = vrot.lane.b32.xlu1 %v1077_v2, %s1018_s5  ;;  %431 = vrot.lane.b32.xlu0 %v1073_v0, %s1018_s5 }
  0x31   : > { %502 = vrot.lane.b32.xlu0 %v556_v4, %s1016_s29  ;;  %429 = vrot.lane.b32.xlu1 %v1075_v1, %s1018_s5 }
  0x35   : > { %405 = vrot.lane.b32.xlu1 %v1077_v2, %s1019_s6  ;;  %403 = vrot.lane.b32.xlu0 %v1073_v0, %s1019_s6 }
  0x39   : > { %474 = vrot.lane.b32.xlu0 %v556_v4, %s1017_s30  ;;  %401 = vrot.lane.b32.xlu1 %v1075_v1, %s1019_s6 }
  0x3d   : > { %377 = vrot.lane.b32.xlu1 %v1077_v2, %s1020_s7  ;;  %375 = vrot.lane.b32.xlu0 %v1073_v0, %s1020_s7 }
  0x41   : > { %446 = vrot.lane.b32.xlu0 %v556_v4, %s1018_s5  ;;  %373 = vrot.lane.b32.xlu1 %v1075_v1, %s1020_s7 }
  0x45   : > { %349 = vrot.lane.b32.xlu1 %v1077_v2, %s1021_s8  ;;  %347 = vrot.lane.b32.xlu0 %v1073_v0, %s1021_s8 }
  0x49   : > { %418 = vrot.lane.b32.xlu0 %v556_v4, %s1019_s6  ;;  %345 = vrot.lane.b32.xlu1 %v1075_v1, %s1021_s8 }
  0x4d   : > { %390 = vrot.lane.b32.xlu0 %v556_v4, %s1020_s7  ;;  %362 = vrot.lane.b32.xlu1 %v556_v4, %s1021_s8 }
  0x51   : > { %594 = vperm.xlu0 %988, %v591_v6  }
  0x83   : > { %v544_v7 = vpop.permute.xlu0 %543  ;;  %v542_v8 = vpop.permute.xlu1 %541 }
  0x84   : > { %v548_v9 = vsel %vm547_vm1, %v542_v8, %v544_v7 }
  0x87   : > { %v546_v10 = vpop.permute.xlu0 %545  ;;  %v516_v11 = vpop.permute.xlu1 %515 }
  0x88   : > { %v549_v12 = vsel %vm547_vm1, %v544_v7, %v546_v10  ;;  %555 = vst.msk [vmem:[#allocation2 + $0xd0] sm:$0xff] %vm547_vm1, %v546_v10  ;;  %vm597_vm1 = vcmask 588800  }
  0x89   : > { %615 = vmatprep.subr.mxu0 %v549_v12 }
  0x8a   : > { %616 = vmatpush1.msra.mxu0 %v548_v9 }
  0x8b   : > { %v518_v13 = vpop.permute.xlu0 %517  ;;  %v514_v14 = vpop.permute.xlu1 %513 }
  0x8c   : > { %v521_v15 = vsel %vm519_vm2, %v516_v11, %v518_v13  ;;  %527 = vst.msk [vmem:[#allocation2 + $0xb8] sm:$0xff] %vm519_vm2, %v518_v13  ;;  %v520_v16 = vsel %vm519_vm2, %v514_v14, %v516_v11 }
  0x8d   : > { %617 = vmatprep.subr.mxu0 %v521_v15 }
  0x8e   : > { %618 = vmatpush1.msra.mxu0 %v520_v16 }
  0x8f   : > { %v490_v17 = vpop.permute.xlu1 %489  ;;  %v488_v18 = vpop.permute.xlu0 %487 }
  0x90   : > { %499 = vst.msk [vmem:[#allocation2 + $0xa0] sm:$0xff] %vm491_vm3, %v490_v17  ;;  %v493_v19 = vsel %vm491_vm3, %v488_v18, %v490_v17 }
  0x91   : > { %619 = vmatprep.subr.mxu0 %v493_v19 }
  0x93   : > { %v559_v20 = vpop.permute.xlu0 %558  ;;  %v486_v21 = vpop.permute.xlu1 %485 }
  0x94   : > { %562 = vst.msk [vmem:[#allocation2 + $0xd0] sm:$0xff] %vm561_vm4, %v559_v20  ;;  %v492_v22 = vsel %vm491_vm3, %v486_v21, %v488_v18 }
  0x95   : > { %620 = vmatpush1.msra.mxu0 %v492_v22 }
  0x97   : > { %v462_v23 = vpop.permute.xlu1 %461  ;;  %v460_v24 = vpop.permute.xlu0 %459 }
  0x98   : > { %471 = vst.msk [vmem:[#allocation2 + $0x88] sm:$0xff] %vm463_vm5, %v462_v23  ;;  %v465_v25 = vsel %vm463_vm5, %v460_v24, %v462_v23 }
  0x99   : > { %621 = vmatprep.subr.mxu0 %v465_v25 }
  0x9b   : > { %v531_v26 = vpop.permute.xlu0 %530  ;;  %v458_v27 = vpop.permute.xlu1 %457  ;;  %v590_v28 = vld [vmem:[#allocation2 + $0xd0] sm:$0xff] }
  0x9c   : > { %534 = vst.msk [vmem:[#allocation2 + $0xb8] sm:$0xff] %vm533_vm6, %v531_v26  ;;  %v464_v29 = vsel %vm463_vm5, %v458_v27, %v460_v24  ;;  %929 = vmatpush3.msra.mxu1 %v590_v28 }
  0x9d   : > { %930 = vmatprep.subr.mxu1 %v1015_v3  ;;  %622 = vmatpush1.msra.mxu0 %v464_v29 }
  0x9f   : > { %v434_v30 = vpop.permute.xlu1 %433  ;;  %v432_v31 = vpop.permute.xlu0 %431 }
  0xa0   : > { %443 = vst.msk [vmem:[#allocation2 + $0x70] sm:$0xff] %vm435_vm7, %v434_v30  ;;  %v437_v32 = vsel %vm435_vm7, %v432_v31, %v434_v30 }
  0xa1   : > { %623 = vmatprep.subr.mxu0 %v437_v32 }
  0xa3   : > { %v503_v33 = vpop.permute.xlu0 %502  ;;  %v430_v34 = vpop.permute.xlu1 %429  ;;  %v587_v35 = vld [vmem:[#allocation2 + $0xb8] sm:$0xff] }
  0xa4   : > { %506 = vst.msk [vmem:[#allocation2 + $0xa0] sm:$0xff] %vm505_vm8, %v503_v33  ;;  %v436_v36 = vsel %vm435_vm7, %v430_v34, %v432_v31  ;;  %931 = vmatpush3.msra.mxu1 %v587_v35 }
  0xa5   : > { %932 = vmatprep.subr.mxu1 %v1015_v3  ;;  %624 = vmatpush1.msra.mxu0 %v436_v36 }
  0xa7   : > { %v406_v37 = vpop.permute.xlu1 %405  ;;  %v404_v38 = vpop.permute.xlu0 %403 }
  0xa8   : > { %415 = vst.msk [vmem:[#allocation2 + $0x58] sm:$0xff] %vm407_vm9, %v406_v37  ;;  %v409_v39 = vsel %vm407_vm9, %v404_v38, %v406_v37 }
  0xa9   : > { %625 = vmatprep.subr.mxu0 %v409_v39 }
  0xab   : > { %v475_v40 = vpop.permute.xlu0 %474  ;;  %v402_v41 = vpop.permute.xlu1 %401  ;;  %v584_v42 = vld [vmem:[#allocation2 + $0xa0] sm:$0xff] }
  0xac   : > { %478 = vst.msk [vmem:[#allocation2 + $0x88] sm:$0xff] %vm477_vm10, %v475_v40  ;;  %v408_v43 = vsel %vm407_vm9, %v402_v41, %v404_v38  ;;  %933 = vmatpush3.msra.mxu1 %v584_v42 }
  0xad   : > { %934 = vmatprep.subr.mxu1 %v1015_v3  ;;  %626 = vmatpush1.msra.mxu0 %v408_v43 }
  0xaf   : > { %v378_v44 = vpop.permute.xlu1 %377  ;;  %v376_v45 = vpop.permute.xlu0 %375 }
  0xb0   : > { %387 = vst.msk [vmem:[#allocation2 + $0x40] sm:$0xff] %vm379_vm11, %v378_v44  ;;  %v381_v46 = vsel %vm379_vm11, %v376_v45, %v378_v44 }
  0xb1   : > { %627 = vmatprep.subr.mxu0 %v381_v46 }
  0xb3   : > { %v447_v47 = vpop.permute.xlu0 %446  ;;  %v374_v48 = vpop.permute.xlu1 %373  ;;  %v581_v49 = vld [vmem:[#allocation2 + $0x88] sm:$0xff] }
  0xb4   : > { %450 = vst.msk [vmem:[#allocation2 + $0x70] sm:$0xff] %vm449_vm12, %v447_v47  ;;  %v380_v50 = vsel %vm379_vm11, %v374_v48, %v376_v45  ;;  %935 = vmatpush3.msra.mxu1 %v581_v49 }
  0xb5   : > { %936 = vmatprep.subr.mxu1 %v1015_v3  ;;  %628 = vmatpush1.msra.mxu0 %v380_v50 }
  0xb7   : > { %v350_v51 = vpop.permute.xlu1 %349  ;;  %v348_v52 = vpop.permute.xlu0 %347 }
  0xb8   : > { %359 = vst.msk [vmem:[#allocation2 + $0x28] sm:$0xff] %vm351_vm13, %v350_v51  ;;  %v353_v53 = vsel %vm351_vm13, %v348_v52, %v350_v51 }
  0xb9   : > { %629 = vmatprep.subr.mxu0 %v353_v53 }
  0xbb   : > { %v419_v54 = vpop.permute.xlu0 %418  ;;  %v346_v55 = vpop.permute.xlu1 %345  ;;  %v578_v56 = vld [vmem:[#allocation2 + $0x70] sm:$0xff] }
  0xbc   : > { %422 = vst.msk [vmem:[#allocation2 + $0x58] sm:$0xff] %vm421_vm14, %v419_v54  ;;  %v352_v57 = vsel %vm351_vm13, %v346_v55, %v348_v52  ;;  %937 = vmatpush3.msra.mxu1 %v578_v56 }
  0xbd   : > { %938 = vmatprep.subr.mxu1 %v1015_v3  ;;  %630 = vmatpush1.msra.mxu0 %v352_v57 }
  0xbe   : > { %631 = vmatprep.subr.mxu0 %v1073_v0 }
  0xbf   : > { %v391_v59 = vpop.permute.xlu0 %390  ;;  %v363_v60 = vpop.permute.xlu1 %362  ;;  %632 = vmatpush1.msra.mxu0 %v1075_v1 }
  0xc0   : > { %394 = vst.msk [vmem:[#allocation2 + $0x40] sm:$0xff] %vm393_vm15, %v391_v59  ;;  %912 = vmatmul.mubr.msk.f32.vlgmr.msra.gmra.mxu0 %vm597_vm1, %v563_v58 }
  0xc1   : > { %366 = vst.msk [vmem:[#allocation2 + $0x28] sm:$0xff] %vm365_vm0, %v363_v60 }
  0xc3   : > { %v575_v61 = vld [vmem:[#allocation2 + $0x58] sm:$0xff] }
  0xc4   : > { %939 = vmatpush3.msra.mxu1 %v575_v61 }
  0xc5   : > { %940 = vmatprep.subr.mxu1 %v1015_v3 }
  0xc7   : > { %v572_v62 = vld [vmem:[#allocation2 + $0x40] sm:$0xff] }
  0xc8   : > { %v569_v63 = vld [vmem:[#allocation2 + $0x28] sm:$0xff]  ;;  %941 = vmatpush3.msra.mxu1 %v572_v62 }
  0xc9   : > { %942 = vmatprep.subr.mxu1 %v1015_v3 }
  0xca   : > { %943 = vmatpush3.msra.mxu1 %v569_v63 }
  0xcb   : > { %944 = vmatprep.subr.mxu1 %v1015_v3 }
  0xcc   : > { %945 = vmatpush3.msra.mxu1 %v1077_v2  ;;  %v595_v0 = vpop.permute.xlu0 %594 }
  0xcd   : > { %947 = vmatmul.mubr.msk.f32.vlgmr.msra.gmra.mxu1 %vm597_vm1, %v563_v58 }
 0x180   : > { %v667_v1 = vpop.f32.mrf.mxu0 }
 0x181   : > { %v668_v4 = vadd.f32 %v667_v1, %v595_v0 }
 0x182   : > { %v669_v5 = vpop.f32.mrf.mxu0 }
 0x183   : > { %v742_v6 = vmax.f32 %v668_v4, 0.0  ;;  %v670_v7 = vadd.f32 %v669_v5, %v595_v0 }
 0x185   : > { %745 = vst [vmem:[%s331_s20] sm:$0xff] %v742_v6  ;;  %v743_v8 = vmax.f32 %v670_v7, 0.0 }
 0x187   : > { %746 = vst [vmem:[%s331_s20 + $0x8] sm:$0xff] %v743_v8 }
 0x18d   : > { %v738_v9 = vpop.f32.mrf.mxu1 }
 0x18e   : > { %v739_v3 = vadd.f32 %v738_v9, %v595_v0 }
 0x18f   : > { %v948_v10 = vpop.f32.mrf.mxu1 }
 0x190   : > { %v744_v2 = vmax.f32 %v739_v3, 0.0 }
 0x192   : > { %747 = vst [vmem:[%s331_s20 + $0x10] sm:$0xff] %v744_v2 }
 0x193 PF: > { %s14_s17 = sadd.s32 1, %s1011_s17   ;;  %s1146_s15 = smov %s1007_s16 }
 0x194   : > { %p11_p5 = scmp.ge.s32.totalorder %s14_s17, 4   ;;  %s1147_s16 = smov %s1149_s18 }
 0x196   :  { %13 = sbr.rel (!%p11_p5) target bundleno = 2 (0x2), region = 75 }

</bundles_post_ra>
